<compile_context>
chip_gen: v7x
topology: tpu7x:2x2x1
jax: 0.10.0
libtpu: 0.0.40
codegen_flags: <defaults>
</compile_context>

<pallas_src>
import functools

import jax
import jax.numpy as jnp
from jax.experimental import pallas as pl
from jax.experimental.pallas import tpu as pltpu

_MIB = 1024 * 1024
_F32_EPS = float(jnp.finfo(jnp.float32).eps)


# ---------------------------------------------------------------------------
# Hardware query (generation-aware budgets)
# ---------------------------------------------------------------------------
def _vmem_capacity_bytes():
    """Physical VMEM per TensorCore; conservative 64 MiB (v7x-class) fallback."""
    try:
        info = pltpu.get_tpu_info()
        for attr in ("vmem_capacity_bytes", "vmem_size_bytes", "vmem_bytes"):
            v = getattr(info, attr, None)
            if v:
                return int(v)
    except Exception:
        pass
    return 64 * _MIB


# ---------------------------------------------------------------------------
# Shared scalar qparam derivation (traced inside the kernels)
# ---------------------------------------------------------------------------
def _derive_scale(max_abs, half_range, pow2scale):
    scale = max_abs / jnp.float32(half_range)
    if pow2scale:
        scale = jnp.exp2(jnp.round(jnp.log2(scale)))
    # eps floor: guards max_abs == 0 / denormal scale -> inf inv_scale / NaN output.
    return jnp.maximum(scale, jnp.float32(_F32_EPS))


# ---------------------------------------------------------------------------
# Kernel A: fused single-block path (whole tensor resident in VMEM)
# 1 HBM read + 1 HBM write.
# ---------------------------------------------------------------------------
def _fused_qdq_kernel(x_ref, o_ref, *, quant_min, quant_max, pow2scale):
    x = x_ref[...]
    if x.dtype != jnp.float32:
        x = x.astype(jnp.float32)
    max_abs = jnp.max(jnp.abs(x))
    scale = _derive_scale(max_abs, (quant_max - quant_min) / 2.0, pow2scale)
    inv_scale = 1.0 / scale
    # NOTE: multiply by precomputed 1/scale (one VALU mul) instead of a per-element
    # divide; may differ from PyTorch's x/scale by one quantum at exact .5 rounding
    # boundaries (exact when pow2scale=True).
    xq = jnp.round(jnp.clip(x * inv_scale, float(quant_min), float(quant_max)))
    o_ref[...] = (xq * scale).astype(o_ref.dtype)


# ---------------------------------------------------------------------------
# Kernel B1: per-tile max|x| partials. Each grid step writes its own (8,128)
# block -> fully parallel grid (both v7x TensorCores usable).
# ---------------------------------------------------------------------------
def _maxabs_kernel(x_ref, o_ref):
    # abs / max are exact in the native dtype (bf16/f16/f32); cast only the scalar.
    m = jnp.max(jnp.abs(x_ref[...])).astype(jnp.float32)
    o_ref[...] = jnp.full((8, 128), m, dtype=jnp.float32)


# ---------------------------------------------------------------------------
# Kernel B2: quantize-dequantize. The partial-max reduce and scale derivation are
# folded in (tiny per-step work) so no extra XLA kernels sit between the passes.
# ---------------------------------------------------------------------------
def _qdq_kernel(partials_ref, x_ref, o_ref, *, quant_min, quant_max, pow2scale):
    max_abs = jnp.max(partials_ref[...])
    scale = _derive_scale(max_abs, (quant_max - quant_min) / 2.0, pow2scale)
    inv_scale = 1.0 / scale
    x = x_ref[...]
    if x.dtype != jnp.float32:
        x = x.astype(jnp.float32)
    xq = jnp.round(jnp.clip(x * inv_scale, float(quant_min), float(quant_max)))
    o_ref[...] = (xq * scale).astype(o_ref.dtype)


# ---------------------------------------------------------------------------
# Wrapper helpers (layout selection)
# ---------------------------------------------------------------------------
def _choose_layout(n):
    """Lane-dense (rows, cols) factorization with rows % 8 == 0, cols % 128 == 0."""
    for c in (2048, 1024, 512, 256, 128):
        if n % c == 0 and (n // c) % 8 == 0:
            return n // c, c
    return None


def _flatten_fused(x):
    """Lane-dense 2D view for the fused full-array-in-VMEM path."""
    n = x.size
    lay = _choose_layout(n)
    if lay is not None:
        return x.reshape(lay)
    for c in (2048, 1024, 512, 256, 128):
        if n % c == 0:
            return x.reshape(n // c, c)
    if x.ndim >= 2 and x.shape[-1] % 128 == 0:
        return x.reshape(-1, x.shape[-1])
    return x.reshape(1, n)  # full-dim block is still legal; just not lane-packed


# ---------------------------------------------------------------------------
# Public wrapper
# ---------------------------------------------------------------------------
def custom_fake_quantize(
    x,
    precision,
    pow2scale=False,
    *,
    fused_max_elems=None,   # None -> derived from VMEM capacity
    block_bytes=None,       # None -> generation-aware default
    donate=False,           # alias the input buffer to the output
):
    assert isinstance(precision, int) and 2 <= precision <= 32
    quant_min = -(2 ** (precision - 1))
    quant_max = 2 ** (precision - 1) - 1

    orig_shape = x.shape
    orig_dtype = x.dtype
    n = x.size
    itemsize = jnp.dtype(orig_dtype).itemsize

    # ------------------ generation-aware budgets ------------------
    vmem_cap = _vmem_capacity_bytes()
    small_vmem = vmem_cap <= 64 * _MIB          # v7x-class: 64 MiB VMEM / TC, 2 TCs
    if block_bytes is None:
        # v5e/v6e (128 MiB VMEM): large blocks push the mem-bound kernel toward the
        # HBM-roofline plateau. v7x: keep blocks smaller (less VMEM, faster HBM).
        block_bytes = (3 if small_vmem else 6) * _MIB
    if fused_max_elems is None:
        # Fused path = 1 read + 1 write (vs 2 reads + 1 write tiled) but runs as a
        # grid=(1,) single-TensorCore block with no overlap -> earlier crossover on
        # v7x where the tiled path can use both TCs.
        fused_budget = (16 if small_vmem else 40) * _MIB
        per_elem = 4 * itemsize + 8   # double-buffered native in+out + ~2 f32 temps
        fused_max_elems = fused_budget // per_elem
    vmem_limit = (48 if small_vmem else 96) * _MIB

    # ------------------ small tensors: fused single-read path ------------------
    if n <= fused_max_elems:
        x2 = _flatten_fused(x)
        R, C = x2.shape
        out = pl.pallas_call(
            functools.partial(
                _fused_qdq_kernel,
                quant_min=quant_min,
                quant_max=quant_max,
                pow2scale=pow2scale,
            ),
            out_shape=jax.ShapeDtypeStruct((R, C), orig_dtype),
            grid=(1,),
            in_specs=[pl.BlockSpec((R, C), lambda i: (0, 0))],
            out_specs=pl.BlockSpec((R, C), lambda i: (0, 0)),
            compiler_params=pltpu.CompilerParams(vmem_limit_bytes=vmem_limit),
            input_output_aliases={0: 0} if donate else {},
        )(x2)
        return out.reshape(orig_shape)

    # ------------------ large tensors: two-pass tiled path ------------------
    layout = _choose_layout(n)
    if layout is None:
        # Pad the flat tensor with zeros to a lane/sublane friendly (8k, 512) shape;
        # zeros don't change max|x| and quantize back to zero (sliced off below).
        # TODO(synk): the pad costs one extra HBM copy; a ragged-tail kernel would avoid it.
        C = 512
        R = pl.cdiv(n, 8 * C) * 8
        x2 = jnp.pad(x.reshape(-1), (0, R * C - n)).reshape(R, C)
        padded = True
    else:
        R, C = layout
        x2 = x.reshape(R, C)
        padded = False

    tile_r = max(8, (block_bytes // (C * itemsize)) // 8 * 8)
    tile_r = min(tile_r, R)
    while R % tile_r != 0:      # R is a multiple of 8 -> terminates at >= 8
        tile_r -= 8
    num_tiles = R // tile_r
    grid = (num_tiles,)

    cparams = pltpu.CompilerParams(
        # TODO(synk): confirm "parallel" shards the tile axis across both v7x TCs.
        dimension_semantics=("parallel",),
        vmem_limit_bytes=vmem_limit,
    )

    # ---- pass 1: per-tile partial max|x| into disjoint (8,128) blocks ----
    partials = pl.pallas_call(
        _maxabs_kernel,
        out_shape=jax.ShapeDtypeStruct((num_tiles * 8, 128), jnp.float32),
        grid=grid,
        in_specs=[pl.BlockSpec((tile_r, C), lambda i: (i, 0))],
        out_specs=pl.BlockSpec((8, 128), lambda i: (i, 0)),
        compiler_params=cparams,
    )(x2)

    # ---- pass 2: quantize-dequantize (reduce + qparam math folded in) ----
    out = pl.pallas_call(
        functools.partial(
            _qdq_kernel,
            quant_min=quant_min,
            quant_max=quant_max,
            pow2scale=pow2scale,
        ),
        out_shape=jax.ShapeDtypeStruct((R, C), orig_dtype),
        grid=grid,
        in_specs=[
            # same block index every step -> DMA'd into VMEM once, then revisited
            pl.BlockSpec((num_tiles * 8, 128), lambda i: (0, 0)),
            pl.BlockSpec((tile_r, C), lambda i: (i, 0)),
        ],
        out_specs=pl.BlockSpec((tile_r, C), lambda i: (i, 0)),
        compiler_params=cparams,
        input_output_aliases={1: 0} if donate else {},
    )(partials, x2)

    if padded:
        out = out.reshape(-1)[:n]
    return out.reshape(orig_shape)


def optional_fake_quantize(x, precision=None, pow2scale=False):
    """Pallas equivalent of OptionalFakeQuantize.forward."""
    if precision is None or not isinstance(precision, int):
        return x  # DummyQuantize path
    return custom_fake_quantize(x, precision=precision, pow2scale=pow2scale)


# ---------------------------------------------------------------------------
# Reference (pure JAX, same formulation as the kernels) for correctness checks
# ---------------------------------------------------------------------------
def _reference(x, precision, pow2scale=False):
    quant_min = -(2 ** (precision - 1))
    quant_max = 2 ** (precision - 1) - 1
    xf = x.astype(jnp.float32)
    max_abs = jnp.maximum(-jnp.min(xf), jnp.max(xf))
    scale = max_abs / ((quant_max - quant_min) / 2.0)
    if pow2scale:
        scale = jnp.exp2(jnp.round(jnp.log2(scale)))
    scale = jnp.maximum(scale, jnp.float32(_F32_EPS))
    inv_scale = 1.0 / scale
    xq = jnp.round(jnp.clip(xf * inv_scale, quant_min, quant_max))
    return (xq * scale).astype(x.dtype)


if __name__ == "__main__":
    key = jax.random.PRNGKey(0)
    k1, k2, k3 = jax.random.split(key, 3)

    # 1) small activation tensor (fused single-read path), float32
    x1 = jax.random.normal(k1, (2, 8, 128), dtype=jnp.float32) * 3.0
    y1 = jax.block_until_ready(optional_fake_quantize(x1, precision=8))
    r1 = _reference(x1, 8)
    assert y1.shape == x1.shape and y1.dtype == x1.dtype
    assert jnp.allclose(y1, r1, atol=1e-5, rtol=1e-5), "fused path mismatch vs reference"

    # 1b) pow2scale variant on the fused path
    y1p = jax.block_until_ready(optional_fake_quantize(x1, precision=8, pow2scale=True))
    r1p = _reference(x1, 8, pow2scale=True)
    assert jnp.allclose(y1p, r1p, atol=1e-5, rtol=1e-5), "pow2scale mismatch vs reference"

    # 2) bf16 tensor forced down the two-pass tiled path with a multi-step grid
    x2 = (jax.random.normal(k2, (4, 64, 1024), dtype=jnp.float32) * 2.0).astype(jnp.bfloat16)
    y2 = jax.block_until_ready(
        custom_fake_quantize(x2, precision=8, fused_max_elems=0, block_bytes=128 * 1024)
    )
    r2 = _reference(x2, 8)
    assert y2.shape == x2.shape and y2.dtype == x2.dtype
    assert jnp.allclose(
        y2.astype(jnp.float32), r2.astype(jnp.float32), atol=1e-5, rtol=1e-5
    ), "tiled path mismatch vs reference"

    # 3) odd-sized tensor forced down the tiled path -> exercises the padding fallback
    x3 = jax.random.normal(k3, (3, 5, 7), dtype=jnp.float32) * 1.7
    y3 = jax.block_until_ready(custom_fake_quantize(x3, precision=6, fused_max_elems=0))
    r3 = _reference(x3, 6)
    assert y3.shape == x3.shape and y3.dtype == x3.dtype
    assert jnp.allclose(y3, r3, atol=1e-5, rtol=1e-5), "padded tiled path mismatch vs reference"

    # 4) precision=None -> identity (DummyQuantize)
    y4 = jax.block_until_ready(optional_fake_quantize(x1, precision=None))
    assert jnp.array_equal(y4, x1)

    print("KERNEL_OK")
</pallas_src>

<mosaic_0001>
module attributes {stable_mosaic.version = 11 : i64} {
  func.func @_fused_qdq_kernel(%arg0: i32, %arg1: memref<8x256xf32, #tpu.memory_space<vmem>>, %arg2: memref<8x256xf32, #tpu.memory_space<vmem>>) attributes {dimension_semantics = [#tpu.dimension_semantics<arbitrary>], iteration_bounds = array<i64: 1>, scalar_prefetch = 0 : i64, scratch_operands = 0 : i64, tpu.core_type = #tpu.core_type<tc>, window_params = [{pipeline_mode = #tpu.pipeline_mode<synchronous>, transform_indices = @transform_0, window_bounds = array<i64: 8, 256>}, {pipeline_mode = #tpu.pipeline_mode<synchronous>, transform_indices = @transform_1, window_bounds = array<i64: 8, 256>}]} {
    %c0 = arith.constant 0 : index
    %c0_0 = arith.constant 0 : index
    %0 = vector.load %arg1[%c0, %c0_0] : memref<8x256xf32, #tpu.memory_space<vmem>>, vector<8x256xf32>
    %1 = math.absf %0 : vector<8x256xf32>
    %2 = vector.shape_cast %1 : vector<8x256xf32> to vector<1x8x256xf32>
    %cst = arith.constant dense<0xFF800000> : vector<1xf32>
    %3 = vector.multi_reduction <maximumf>, %2, %cst [1, 2] : vector<1x8x256xf32> to vector<1xf32>
    %4 = vector.shape_cast %3 : vector<1xf32> to vector<1x1x1xf32>
    %5 = vector.extract %4[0, 0, 0] : f32 from vector<1x1x1xf32>
    %cst_1 = arith.constant 1.275000e+02 : f32
    %6 = arith.divf %5, %cst_1 : f32
    %cst_2 = arith.constant 1.1920929E-7 : f32
    %7 = arith.maximumf %6, %cst_2 : f32
    %cst_3 = arith.constant 1.000000e+00 : f32
    %8 = arith.divf %cst_3, %7 : f32
    %9 = vector.broadcast %8 : f32 to vector<8x256xf32>
    %10 = arith.mulf %0, %9 : vector<8x256xf32>
    %cst_4 = arith.constant -1.280000e+02 : f32
    %cst_5 = arith.constant 1.270000e+02 : f32
    %11 = vector.broadcast %cst_4 : f32 to vector<8x256xf32>
    %12 = arith.maximumf %11, %10 : vector<8x256xf32>
    %13 = vector.broadcast %cst_5 : f32 to vector<8x256xf32>
    %14 = arith.minimumf %13, %12 : vector<8x256xf32>
    %15 = math.roundeven %14 : vector<8x256xf32>
    %16 = vector.broadcast %7 : f32 to vector<8x256xf32>
    %17 = arith.mulf %15, %16 : vector<8x256xf32>
    %c0_6 = arith.constant 0 : index
    %c0_7 = arith.constant 0 : index
    %18 = vector.load %arg2[%c0_6, %c0_7] : memref<8x256xf32, #tpu.memory_space<vmem>>, vector<8x256xf32>
    tpu.vector_store %arg2[%c0_6, %c0_7], %17 {strides = array<i32>} : memref<8x256xf32, #tpu.memory_space<vmem>>, vector<8x256xf32>,
    return
  }
  func.func @transform_0(%arg0: i32) -> (i32, i32) {
    %c0_i32 = arith.constant 0 : i32
    %c0_i32_0 = arith.constant 0 : i32
    %c0_i32_1 = arith.constant 0 : i32
    return %c0_i32, %c0_i32_0 : i32, i32
  }
  func.func @transform_1(%arg0: i32) -> (i32, i32) {
    %c0_i32 = arith.constant 0 : i32
    %c0_i32_0 = arith.constant 0 : i32
    %c0_i32_1 = arith.constant 0 : i32
    return %c0_i32, %c0_i32_0 : i32, i32
  }
}

</mosaic_0001>

<bundles_post_ra>
// kernel: tpu_custom_call.1
= control target key start
LH: loop header
LB: loop body
LE: loop exit
PB: predicated region body
PF: predicated region fallthrough
CT: control target
= control target key end

     0   :  { %6 = vsyncpa [#allocation3], 0  ;;  %s167_s0 = inlined_call_operand.hbm [shape: f32[8,256], index: 0, kind: input, shape index: {}]   ;;  %s168_s1 = inlined_call_operand.hbm [shape: f32[8,256], index: 1, kind: output, shape index: {}]  }
   0x1   :  { %7 = vsyncpa [#allocation4], 0  ;;  %s130_s6 = smov [#allocation2]   ;;  %s82_s10 = scalar_lea.hbm %s167_s0, 256 }
   0x2   :  { %s14_s7 = sshll.u32 %s130_s6, 4  ;;  %p83_p0 = scmp.ne.s32.totalorder %s167_s0, %s82_s10  ;;  %s15_s7 = int_to_ptr.vmem [resolvable:$true] %s14_s7 }
   0x3   :  { %p86_p1 = scmp.lt.u32.totalorder %s82_s10, %s167_s0 }
   0x5   :  { %p88_p2 = pnand %p86_p1, %p83_p0 }
   0x7   :  { %91 = shalt.err (!%p88_p2)
}
   0x8   :  { %s92_s15 = scalar_lea.vmem %s15_s7, 256  ;;  %p97_p4 = scmp.lt.s32.totalorder %s15_s7, %s15_s7 }
   0x9   :  { %p93_p3 = scmp.ne.s32.totalorder %s15_s7, %s92_s15  ;;  %p98_p5 = scmp.lt.s32.totalorder %s92_s15, %s92_s15 }
   0xb   :  { %p99_p6 = por %p98_p5, %p97_p4 }
   0xd   :  { %p100_p7 = pnand %p99_p6, %p93_p3 }
   0xf   :  { %103 = shalt.err (!%p100_p7)
}
  0x10   :  { %17 = dma.hbm_to_vmem [thread:$0]  %s167_s0, 256, %s15_s7, [#allocation3]  }
  0x11   :  { %126 = dma.done.wait [#allocation3], 256  }
  0x12   :  { %127 = vsyncadd [#allocation3], 4294967040  ;;  %v21_v0 = vld [vmem:[#allocation2] sm:$0xff]  ;;  %v22_v1 = vld [vmem:[#allocation2 + $0x8] sm:$0xff]  ;;  %s131_s20 = smov 1.1920929e-07   ;;  %s132_s22 = smov [#allocation5]  }
  0x13   :  { %v23_v2 = vand.u32 2147483647, %v21_v0  ;;  %v24_v3 = vand.u32 2147483647, %v22_v1  ;;  %s62_s23 = sshll.u32 %s132_s22, 4  ;;  %s63_s23 = int_to_ptr.vmem [resolvable:$true] %s62_s23 }
  0x14   :  { %s104_s24 = scalar_lea.vmem %s63_s23, 256  ;;  %p109_p9 = scmp.lt.s32.totalorder %s63_s23, %s63_s23 }
  0x15   :  { %v25_v4 = vmax.f32.f32 %v23_v2, %v24_v3  ;;  %p105_p8 = scmp.ne.s32.totalorder %s63_s23, %s104_s24  ;;  %p110_p10 = scmp.lt.s32.totalorder %s104_s24, %s104_s24 }
  0x17   :  { %26 = vmax.xlane.f32.xlu0 %v25_v4  ;;  %p111_p11 = por %p110_p10, %p109_p9 }
  0x19   :  { %p112_p12 = pnand %p111_p11, %p105_p8 }
  0xa4   :  { %v27_v5 = vpop.xlane.xlu0 %26 }
  0xa5   :  { %v28_v6 = vrot.slane %v27_v5, 4 }
  0xa7   :  { %v29_v7 = vmax.f32 %v27_v5, %v28_v6 }
  0xa9   :  { %v30_v8 = vrot.slane %v29_v7, 2 }
  0xab   :  { %v31_v9 = vmax.f32 %v29_v7, %v30_v8 }
  0xad   :  { %v32_v10 = vrot.slane %v31_v9, 1 }
  0xaf   :  { %v33_v11 = vmax.f32 %v31_v9, %v32_v10 }
  0xb1   :  { %71 = vpush %v33_v11 }
  0xe2   :  { %s72_s18 = spop %71 }
  0xe3   :  { %s37_s19 = smul.f32 0.007843138, %s72_s18 }
  0xe5   :  { %s38_s0 = smax.f32 %s131_s20, %s37_s19 }
  0xe6   :  { %v39_v12 = vstv %s38_s0 }
  0xe7   :  { %80 = vrcp.f32 %v39_v12 }
  0xf1   :  { %v81_v13 = vpop.eup %80 }
  0xf2   :  { %73 = vpush %v81_v13 }
 0x123   :  { %s74_s21 = spop %73 }
 0x124   :  { %v42_v14 = vstv %s74_s21 }
 0x125   :  { %v43_v15 = vmul.f32 %v42_v14, %v21_v0  ;;  %v44_v16 = vmul.f32 %v42_v14, %v22_v1 }
 0x127   :  { %v45_v17 = vmax.f32 %v43_v15, -128.0  ;;  %v46_v18 = vmax.f32 %v44_v16, -128.0 }
 0x129   :  { %v47_v19 = vmin.f32 %v45_v17, 127.0  ;;  %v48_v20 = vmin.f32 %v46_v18, 127.0 }
 0x12b   :  { %v75_v21 = vround.rtne.f32 %v47_v19  ;;  %v76_v22 = vround.rtne.f32 %v48_v20 }
 0x12d   :  { %v52_v23 = vmul.f32 %v75_v21, %v39_v12  ;;  %v53_v24 = vmul.f32 %v76_v22, %v39_v12 }
 0x12f   :  { %54 = vst [vmem:[#allocation5] sm:$0xff] %v52_v23  ;;  %55 = vst [vmem:[#allocation5 + $0x8] sm:$0xff] %v53_v24 }
 0x130   :  { %115 = shalt.err (!%p112_p12)
}
 0x131   :  { %s116_s27 = scalar_lea.hbm %s168_s1, 256 }
 0x132   :  { %p117_p13 = scmp.ne.s32.totalorder %s168_s1, %s116_s27  ;;  %p120_p0 = scmp.lt.u32.totalorder %s116_s27, %s168_s1 }
 0x134   :  { %p122_p1 = pnand %p120_p0, %p117_p13 }
 0x136   :  { %125 = shalt.err (!%p122_p1)
}
 0x137   :  { %65 = dma.vmem_to_hbm [thread:$0]  %s63_s23, 256, %s168_s1, [#allocation4]  }
 0x138   :  { %128 = dma.done.wait [#allocation4], 256  }
 0x139   :  { %129 = vsyncadd [#allocation4], 4294967040 }
 0x13a   :  { %69 = vsyncpa [#allocation3], 1 }
 0x13b   :  { %70 = vsyncpa [#allocation4], 1 }

</bundles_post_ra>
